<compile_context>
chip_gen: v7x
topology: tpu7x:2x2x1
jax: 0.10.0
libtpu: 0.0.40
codegen_flags: <defaults>
</compile_context>

<pallas_src>
import jax
import jax.numpy as jnp
from jax.experimental import pallas as pl
from jax.experimental.pallas import tpu as pltpu


def _round_up(a, b):
    return ((a + b - 1) // b) * b


# ----------------------------- Pallas kernels -------------------------------

def conv_bn_prelu_kernel(p_ref, w_ref, shift_ref, alpha_ref, o_ref, acc_ref):
    # p: [TM, TK] bf16 im2col patches, w: [TK, OC_pad] bf16 (BN scale folded in)
    # shift/alpha: [1, OC_pad] f32, o: [TM, OC_pad] f32, acc: [TM, OC_pad] f32
    kk = pl.program_id(1)

    @pl.when(kk == 0)
    def _():
        acc_ref[...] = jnp.zeros_like(acc_ref)

    acc_ref[...] += jnp.dot(p_ref[...], w_ref[...],
                            preferred_element_type=jnp.float32)

    @pl.when(kk == pl.num_programs(1) - 1)
    def _():
        y = acc_ref[...] + shift_ref[...]                      # folded eval-mode BN
        o_ref[...] = jnp.where(y >= 0.0, y, alpha_ref[...] * y)  # per-channel PReLU


def head_kernel(x_ref, w1_ref, b1_ref, alpha_ref, w2_ref, b2_ref, o_ref):
    # x: [N, S, C] channels-last view of the last feature map (no transposes).
    pooled = jnp.mean(x_ref[...], axis=1)              # AdaptiveAvgPool2d(1)+Flatten
    h = jnp.dot(pooled, w1_ref[...], preferred_element_type=jnp.float32) + b1_ref[...]
    h = jnp.where(h >= 0.0, h, alpha_ref[...] * h)     # PReLU(ffn_dim)
    # Dropout(p=0.1) is identity in eval mode.
    o_ref[...] = jnp.dot(h, w2_ref[...], preferred_element_type=jnp.float32) + b2_ref[...]


# ------------------------------- glue (JAX) ---------------------------------

def im2col_nhwc(x, k, stride, pad):
    # x: [N, H, W, C] -> patches [N*OH*OW, k*k*C], K index order = (i, j, c).
    N, H, W, C = x.shape
    xp = jnp.pad(x, ((0, 0), (pad, pad), (pad, pad), (0, 0)))
    OH = (H + 2 * pad - k) // stride + 1
    OW = (W + 2 * pad - k) // stride + 1
    cols = []
    for i in range(k):
        for j in range(k):
            cols.append(xp[:, i:i + stride * OH:stride, j:j + stride * OW:stride, :])
    patches = jnp.concatenate(cols, axis=-1)              # [N, OH, OW, k*k*C]
    return patches.reshape(N * OH * OW, k * k * C), OH, OW


def conv_block(x_nhwc, w_oihw, gamma, beta, alpha, *, k, stride, pad,
               eps=1e-5, tm=512, tk=512):
    # SConv2d(bias=False) + BatchNorm2d(eval) + PReLU(C); NHWC in, NHWC out.
    assert tm % 8 == 0 and tk % 128 == 0
    N, H, W, C = x_nhwc.shape
    OC = w_oihw.shape[0]
    patches, OH, OW = im2col_nhwc(x_nhwc, k, stride, pad)   # [M, K] f32
    M, K = patches.shape

    # Fold eval-mode BatchNorm (running_mean=0, running_var=1) into the weights.
    scale = gamma / jnp.sqrt(1.0 + eps)                     # [OC]
    w2d = w_oihw.transpose(2, 3, 1, 0).reshape(K, OC) * scale[None, :]
    shift = beta                                            # [OC]

    # Tile sizes / padding: lane-dense OC, (8,128)-aligned blocks, K blocked
    # so the VMEM working set is bounded (v7x) and M blocked for pipelining.
    TM = min(tm, _round_up(M, 8))
    K_pad0 = _round_up(K, 128)
    TK = min(tk, K_pad0)
    K_pad = _round_up(K, TK)
    OC_pad = _round_up(OC, 128)
    M_pad = _round_up(M, TM)

    p_pad = jnp.pad(patches.astype(jnp.bfloat16), ((0, M_pad - M), (0, K_pad - K)))
    w_pad = jnp.pad(w2d.astype(jnp.bfloat16), ((0, K_pad - K), (0, OC_pad - OC)))
    shift_pad = jnp.pad(shift.astype(jnp.float32), (0, OC_pad - OC)).reshape(1, OC_pad)
    alpha_pad = jnp.pad(alpha.astype(jnp.float32), (0, OC_pad - OC)).reshape(1, OC_pad)

    grid = (M_pad // TM, K_pad // TK)
    cost = pl.CostEstimate(
        flops=2 * M_pad * K_pad * OC_pad,
        transcendentals=0,
        bytes_accessed=p_pad.size * 2 + w_pad.size * 2 + M_pad * OC_pad * 4)

    out = pl.pallas_call(
        conv_bn_prelu_kernel,
        out_shape=jax.ShapeDtypeStruct((M_pad, OC_pad), jnp.float32),
        grid_spec=pltpu.PrefetchScalarGridSpec(
            num_scalar_prefetch=0,
            grid=grid,
            in_specs=[
                pl.BlockSpec((TM, TK), lambda m, kk: (m, kk)),
                pl.BlockSpec((TK, OC_pad), lambda m, kk: (kk, 0)),
                pl.BlockSpec((1, OC_pad), lambda m, kk: (0, 0)),
                pl.BlockSpec((1, OC_pad), lambda m, kk: (0, 0)),
            ],
            out_specs=pl.BlockSpec((TM, OC_pad), lambda m, kk: (m, 0)),
            scratch_shapes=[pltpu.VMEM((TM, OC_pad), jnp.float32)],
        ),
        compiler_params=pltpu.CompilerParams(
            dimension_semantics=("parallel", "arbitrary"),
            vmem_limit_bytes=32 * 1024 * 1024),
        cost_estimate=cost,
    )(p_pad, w_pad, shift_pad, alpha_pad)

    out = out[:M, :OC]
    return out.reshape(N, OH, OW, OC)        # stays channels-last (NHWC)


def head_block(y_nhwc, w_lin1, b_lin1, alpha, w_lin2, b_lin2):
    # AdaptiveAvgPool2d(1) + Flatten + SLinear + PReLU + Dropout(eval) + SLinear
    N, H, W, C = y_nhwc.shape
    x_nsc = y_nhwc.reshape(N, H * W, C)      # already channels-last, no transpose
    ffn = w_lin1.shape[0]
    vmem = pl.BlockSpec(memory_space=pltpu.MemorySpace.VMEM)
    return pl.pallas_call(
        head_kernel,
        out_shape=jax.ShapeDtypeStruct((N, 1), jnp.float32),
        in_specs=[vmem] * 6,
        out_specs=vmem,
        cost_estimate=pl.CostEstimate(
            flops=2 * N * C * ffn + 2 * N * ffn,
            transcendentals=0,
            bytes_accessed=x_nsc.size * 4 + (C * ffn + ffn + ffn + ffn + 1 + N) * 4),
    )(x_nsc, w_lin1.T, b_lin1.reshape(1, ffn), alpha.reshape(1, ffn),
      w_lin2.T, b_lin2.reshape(1, 1))


# --------------------------- model construction -----------------------------

def build_config(img_size, color_channels, filter_dim, min_size=5):
    # Mirror D_simple.__init__ to derive the conv stack.
    def div(s):
        return s // 2 + s % 2
    layers = [dict(cin=color_channels, cout=filter_dim, k=3, stride=2, pad=1)]
    cur_dim = filter_dim
    cur_size = div(img_size)
    while cur_size > min_size:
        next_dim = cur_dim * 2 if cur_dim < 512 else cur_dim
        layers.append(dict(cin=cur_dim, cout=next_dim, k=5, stride=2, pad=2))
        cur_dim = next_dim
        cur_size = div(cur_size)
    return layers, cur_dim


def init_params(key, layers, final_dim, ffn_dim):
    params = {"convs": []}
    for cfg in layers:
        key, k1, k2, k3, k4 = jax.random.split(key, 5)
        params["convs"].append(dict(
            w=0.05 * jax.random.normal(
                k1, (cfg["cout"], cfg["cin"], cfg["k"], cfg["k"]), jnp.float32),
            gamma=1.0 + 0.1 * jax.random.normal(k2, (cfg["cout"],), jnp.float32),
            beta=0.1 * jax.random.normal(k3, (cfg["cout"],), jnp.float32),
            alpha=0.25 * jnp.ones((cfg["cout"],), jnp.float32) +
                  0.01 * jax.random.normal(k4, (cfg["cout"],), jnp.float32),
        ))
    key, k1, k2, k3, k4, k5 = jax.random.split(key, 6)
    params["head"] = dict(
        w1=0.1 * jax.random.normal(k1, (ffn_dim, final_dim), jnp.float32),   # [out, in]
        b1=0.01 * jax.random.normal(k2, (ffn_dim,), jnp.float32),
        alpha=0.25 * jnp.ones((ffn_dim,), jnp.float32) +
              0.01 * jax.random.normal(k3, (ffn_dim,), jnp.float32),
        w2=0.1 * jax.random.normal(k4, (1, ffn_dim), jnp.float32),
        b2=0.01 * jax.random.normal(k5, (1,), jnp.float32),
    )
    return params


def d_simple_forward(x_nchw, params, layers, *, tm=512, tk=512):
    # Single layout conversion at the input; everything downstream is NHWC.
    y = jnp.transpose(x_nchw, (0, 2, 3, 1))
    for cfg, p in zip(layers, params["convs"]):
        y = conv_block(y, p["w"], p["gamma"], p["beta"], p["alpha"],
                       k=cfg["k"], stride=cfg["stride"], pad=cfg["pad"],
                       tm=tm, tk=tk)
    h = params["head"]
    return head_block(y, h["w1"], h["b1"], h["alpha"], h["w2"], h["b2"])


# ------------------------------ pure-JAX reference --------------------------

def reference_forward(x_nchw, params, layers, eps=1e-5):
    # Same math as the kernel path: BN scale folded into bf16 weights,
    # f32 accumulation, f32 epilogue, f32 head.
    y = x_nchw
    for cfg, p in zip(layers, params["convs"]):
        scale = p["gamma"] / jnp.sqrt(1.0 + eps)
        w_f = (p["w"] * scale[:, None, None, None]).astype(jnp.bfloat16)
        y = jax.lax.conv_general_dilated(
            y.astype(jnp.bfloat16), w_f,
            (cfg["stride"], cfg["stride"]),
            [(cfg["pad"], cfg["pad"]), (cfg["pad"], cfg["pad"])],
            dimension_numbers=("NCHW", "OIHW", "NCHW"),
            preferred_element_type=jnp.float32)
        y = y + p["beta"][None, :, None, None]
        y = jnp.where(y >= 0, y, p["alpha"][None, :, None, None] * y)
    pooled = jnp.mean(y, axis=(2, 3))
    h = params["head"]
    z = pooled @ h["w1"].T + h["b1"]
    z = jnp.where(z >= 0, z, h["alpha"] * z)
    return z @ h["w2"].T + h["b2"]


# ---------------------------------- main -------------------------------------

if __name__ == "__main__":
    img_size = 16          # power of 2, > 8
    color_channels = 4
    filter_dim = 8
    ffn_dim = 64
    batch = 2

    layers, final_dim = build_config(img_size, color_channels, filter_dim, min_size=5)
    key = jax.random.PRNGKey(0)
    key, kx = jax.random.split(key)
    x = jax.random.normal(kx, (batch, color_channels, img_size, img_size), jnp.float32)
    params = init_params(key, layers, final_dim, ffn_dim)

    # Small tiles here purely to exercise the multi-tile (M, K) grid +
    # accumulator path at toy shapes; use tm=512+, tk=512 at real sizes.
    fwd = jax.jit(lambda xx: d_simple_forward(xx, params, layers, tm=64, tk=128))
    out = jax.block_until_ready(fwd(x))

    ref_fn = jax.jit(lambda xx: reference_forward(xx, params, layers))
    ref = jax.block_until_ready(ref_fn(x))

    assert out.shape == (batch, 1), out.shape
    assert jnp.allclose(out, ref, rtol=2e-2, atol=2e-2), (out, ref)

    print("KERNEL_OK")
</pallas_src>

<mosaic_0001>
module attributes {stable_mosaic.version = 11 : i64} {
  func.func @conv_bn_prelu_kernel(%arg0: i32, %arg1: i32, %arg2: memref<64x128xbf16, #tpu.memory_space<vmem>>, %arg3: memref<128x128xbf16, #tpu.memory_space<vmem>>, %arg4: memref<1x128xf32, #tpu.memory_space<vmem>>, %arg5: memref<1x128xf32, #tpu.memory_space<vmem>>, %arg6: memref<64x128xf32, #tpu.memory_space<vmem>>, %arg7: memref<64x128xf32, #tpu.memory_space<vmem>>) attributes {dimension_semantics = [#tpu.dimension_semantics<parallel>, #tpu.dimension_semantics<arbitrary>], iteration_bounds = array<i64: 2, 1>, scalar_prefetch = 0 : i64, scratch_operands = 1 : i64, tpu.core_type = #tpu.core_type<tc>, window_params = [{transform_indices = @transform_0, window_bounds = array<i64: 64, 128>}, {transform_indices = @transform_1, window_bounds = array<i64: 128, 128>}, {pipeline_mode = #tpu.pipeline_mode<synchronous>, transform_indices = @transform_2, window_bounds = array<i64: 1, 128>}, {pipeline_mode = #tpu.pipeline_mode<synchronous>, transform_indices = @transform_3, window_bounds = array<i64: 1, 128>}, {transform_indices = @transform_4, window_bounds = array<i64: 64, 128>}]} {
    %c0_i32 = arith.constant 0 : i32
    %0 = arith.cmpi eq, %arg1, %c0_i32 : i32
    %1 = arith.extui %0 : i1 to i32
    %c0_i32_0 = arith.constant 0 : i32
    %2 = arith.cmpi ne, %1, %c0_i32_0 : i32
    scf.if %2 {
      %cst_10 = arith.constant 0.000000e+00 : f32
      %12 = vector.broadcast %cst_10 : f32 to vector<64x128xf32>
      %c0_11 = arith.constant 0 : index
      %c0_12 = arith.constant 0 : index
      %13 = vector.load %arg7[%c0_11, %c0_12] : memref<64x128xf32, #tpu.memory_space<vmem>>, vector<64x128xf32>
      tpu.vector_store %arg7[%c0_11, %c0_12], %12 {strides = array<i32>} : memref<64x128xf32, #tpu.memory_space<vmem>>, vector<64x128xf32>,
    } else {
    }
    %c0 = arith.constant 0 : index
    %c0_1 = arith.constant 0 : index
    %3 = vector.load %arg7[%c0, %c0_1] : memref<64x128xf32, #tpu.memory_space<vmem>>, vector<64x128xf32>
    %c0_2 = arith.constant 0 : index
    %c0_3 = arith.constant 0 : index
    %4 = vector.load %arg2[%c0_2, %c0_3] : memref<64x128xbf16, #tpu.memory_space<vmem>>, vector<64x128xbf16>
    %c0_4 = arith.constant 0 : index
    %c0_5 = arith.constant 0 : index
    %5 = vector.load %arg3[%c0_4, %c0_5] : memref<128x128xbf16, #tpu.memory_space<vmem>>, vector<128x128xbf16>
    %cst = arith.constant dense<0.000000e+00> : vector<64x128xf32>
    %6 = tpu.matmul %4, %5, %cst {dimension_numbers = #tpu.dot_dimension_numbers<[1], [0], [0], [1], [0, 0, 1, 1], [], []>} : vector<64x128xbf16>, vector<128x128xbf16>, vector<64x128xf32> -> vector<64x128xf32>
    %7 = arith.addf %3, %6 : vector<64x128xf32>
    %c0_6 = arith.constant 0 : index
    %c0_7 = arith.constant 0 : index
    %8 = vector.load %arg7[%c0_6, %c0_7] : memref<64x128xf32, #tpu.memory_space<vmem>>, vector<64x128xf32>
    tpu.vector_store %arg7[%c0_6, %c0_7], %7 {strides = array<i32>} : memref<64x128xf32, #tpu.memory_space<vmem>>, vector<64x128xf32>,
    %c0_i32_8 = arith.constant 0 : i32
    %9 = arith.cmpi eq, %arg1, %c0_i32_8 : i32
    %10 = arith.extui %9 : i1 to i32
    %c0_i32_9 = arith.constant 0 : i32
    %11 = arith.cmpi ne, %10, %c0_i32_9 : i32
    scf.if %11 {
      %c0_10 = arith.constant 0 : index
      %c0_11 = arith.constant 0 : index
      %12 = vector.load %arg7[%c0_10, %c0_11] : memref<64x128xf32, #tpu.memory_space<vmem>>, vector<64x128xf32>
      %c0_12 = arith.constant 0 : index
      %c0_13 = arith.constant 0 : index
      %13 = vector.load %arg4[%c0_12, %c0_13] : memref<1x128xf32, #tpu.memory_space<vmem>>, vector<1x128xf32>
      %14 = vector.broadcast %13 : vector<1x128xf32> to vector<64x128xf32>
      %15 = arith.addf %12, %14 : vector<64x128xf32>
      %cst_14 = arith.constant 0.000000e+00 : f32
      %16 = vector.broadcast %cst_14 : f32 to vector<64x128xf32>
      %17 = arith.cmpf oge, %15, %16 : vector<64x128xf32>
      %c0_15 = arith.constant 0 : index
      %c0_16 = arith.constant 0 : index
      %18 = vector.load %arg5[%c0_15, %c0_16] : memref<1x128xf32, #tpu.memory_space<vmem>>, vector<1x128xf32>
      %19 = vector.broadcast %18 : vector<1x128xf32> to vector<64x128xf32>
      %20 = arith.mulf %19, %15 : vector<64x128xf32>
      %21 = arith.select %17, %15, %20 : vector<64x128xi1>, vector<64x128xf32>
      %c0_17 = arith.constant 0 : index
      %c0_18 = arith.constant 0 : index
      %22 = vector.load %arg6[%c0_17, %c0_18] : memref<64x128xf32, #tpu.memory_space<vmem>>, vector<64x128xf32>
      tpu.vector_store %arg6[%c0_17, %c0_18], %21 {strides = array<i32>} : memref<64x128xf32, #tpu.memory_space<vmem>>, vector<64x128xf32>,
    } else {
    }
    return
  }
  func.func @transform_0(%arg0: i32, %arg1: i32) -> (i32, i32) {
    %c0_i32 = arith.constant 0 : i32
    return %arg0, %arg1 : i32, i32
  }
  func.func @transform_1(%arg0: i32, %arg1: i32) -> (i32, i32) {
    %c0_i32 = arith.constant 0 : i32
    %c0_i32_0 = arith.constant 0 : i32
    return %arg1, %c0_i32 : i32, i32
  }
  func.func @transform_2(%arg0: i32, %arg1: i32) -> (i32, i32) {
    %c0_i32 = arith.constant 0 : i32
    %c0_i32_0 = arith.constant 0 : i32
    %c0_i32_1 = arith.constant 0 : i32
    return %c0_i32, %c0_i32_0 : i32, i32
  }
  func.func @transform_3(%arg0: i32, %arg1: i32) -> (i32, i32) {
    %c0_i32 = arith.constant 0 : i32
    %c0_i32_0 = arith.constant 0 : i32
    %c0_i32_1 = arith.constant 0 : i32
    return %c0_i32, %c0_i32_0 : i32, i32
  }
  func.func @transform_4(%arg0: i32, %arg1: i32) -> (i32, i32) {
    %c0_i32 = arith.constant 0 : i32
    %c0_i32_0 = arith.constant 0 : i32
    return %arg0, %c0_i32 : i32, i32
  }
}

module attributes {stable_mosaic.version = 11 : i64} {
  func.func @conv_bn_prelu_kernel(%arg0: i32, %arg1: i32, %arg2: memref<32x128xbf16, #tpu.memory_space<vmem>>, %arg3: memref<128x128xbf16, #tpu.memory_space<vmem>>, %arg4: memref<1x128xf32, #tpu.memory_space<vmem>>, %arg5: memref<1x128xf32, #tpu.memory_space<vmem>>, %arg6: memref<32x128xf32, #tpu.memory_space<vmem>>, %arg7: memref<32x128xf32, #tpu.memory_space<vmem>>) attributes {dimension_semantics = [#tpu.dimension_semantics<parallel>, #tpu.dimension_semantics<arbitrary>], iteration_bounds = array<i64: 1, 2>, scalar_prefetch = 0 : i64, scratch_operands = 1 : i64, tpu.core_type = #tpu.core_type<tc>, window_params = [{transform_indices = @transform_0, window_bounds = array<i64: 32, 128>}, {transform_indices = @transform_1, window_bounds = array<i64: 128, 128>}, {pipeline_mode = #tpu.pipeline_mode<synchronous>, transform_indices = @transform_2, window_bounds = array<i64: 1, 128>}, {pipeline_mode = #tpu.pipeline_mode<synchronous>, transform_indices = @transform_3, window_bounds = array<i64: 1, 128>}, {transform_indices = @transform_4, window_bounds = array<i64: 32, 128>}]} {
    %c0_i32 = arith.constant 0 : i32
    %0 = arith.cmpi eq, %arg1, %c0_i32 : i32
    %1 = arith.extui %0 : i1 to i32
    %c0_i32_0 = arith.constant 0 : i32
    %2 = arith.cmpi ne, %1, %c0_i32_0 : i32
    scf.if %2 {
      %cst_9 = arith.constant 0.000000e+00 : f32
      %12 = vector.broadcast %cst_9 : f32 to vector<32x128xf32>
      %c0_10 = arith.constant 0 : index
      %c0_11 = arith.constant 0 : index
      %13 = vector.load %arg7[%c0_10, %c0_11] : memref<32x128xf32, #tpu.memory_space<vmem>>, vector<32x128xf32>
      tpu.vector_store %arg7[%c0_10, %c0_11], %12 {strides = array<i32>} : memref<32x128xf32, #tpu.memory_space<vmem>>, vector<32x128xf32>,
    } else {
    }
    %c0 = arith.constant 0 : index
    %c0_1 = arith.constant 0 : index
    %3 = vector.load %arg7[%c0, %c0_1] : memref<32x128xf32, #tpu.memory_space<vmem>>, vector<32x128xf32>
    %c0_2 = arith.constant 0 : index
    %c0_3 = arith.constant 0 : index
    %4 = vector.load %arg2[%c0_2, %c0_3] : memref<32x128xbf16, #tpu.memory_space<vmem>>, vector<32x128xbf16>
    %c0_4 = arith.constant 0 : index
    %c0_5 = arith.constant 0 : index
    %5 = vector.load %arg3[%c0_4, %c0_5] : memref<128x128xbf16, #tpu.memory_space<vmem>>, vector<128x128xbf16>
    %cst = arith.constant dense<0.000000e+00> : vector<32x128xf32>
    %6 = tpu.matmul %4, %5, %cst {dimension_numbers = #tpu.dot_dimension_numbers<[1], [0], [0], [1], [0, 0, 1, 1], [], []>} : vector<32x128xbf16>, vector<128x128xbf16>, vector<32x128xf32> -> vector<32x128xf32>
    %7 = arith.addf %3, %6 : vector<32x128xf32>
    %c0_6 = arith.constant 0 : index
    %c0_7 = arith.constant 0 : index
    %8 = vector.load %arg7[%c0_6, %c0_7] : memref<32x128xf32, #tpu.memory_space<vmem>>, vector<32x128xf32>
    tpu.vector_store %arg7[%c0_6, %c0_7], %7 {strides = array<i32>} : memref<32x128xf32, #tpu.memory_space<vmem>>, vector<32x128xf32>,
    %c1_i32 = arith.constant 1 : i32
    %9 = arith.cmpi eq, %arg1, %c1_i32 : i32
    %10 = arith.extui %9 : i1 to i32
    %c0_i32_8 = arith.constant 0 : i32
    %11 = arith.cmpi ne, %10, %c0_i32_8 : i32
    scf.if %11 {
      %c0_9 = arith.constant 0 : index
      %c0_10 = arith.constant 0 : index
      %12 = vector.load %arg7[%c0_9, %c0_10] : memref<32x128xf32, #tpu.memory_space<vmem>>, vector<32x128xf32>
      %c0_11 = arith.constant 0 : index
      %c0_12 = arith.constant 0 : index
      %13 = vector.load %arg4[%c0_11, %c0_12] : memref<1x128xf32, #tpu.memory_space<vmem>>, vector<1x128xf32>
      %14 = vector.broadcast %13 : vector<1x128xf32> to vector<32x128xf32>
      %15 = arith.addf %12, %14 : vector<32x128xf32>
      %cst_13 = arith.constant 0.000000e+00 : f32
      %16 = vector.broadcast %cst_13 : f32 to vector<32x128xf32>
      %17 = arith.cmpf oge, %15, %16 : vector<32x128xf32>
      %c0_14 = arith.constant 0 : index
      %c0_15 = arith.constant 0 : index
      %18 = vector.load %arg5[%c0_14, %c0_15] : memref<1x128xf32, #tpu.memory_space<vmem>>, vector<1x128xf32>
      %19 = vector.broadcast %18 : vector<1x128xf32> to vector<32x128xf32>
      %20 = arith.mulf %19, %15 : vector<32x128xf32>
      %21 = arith.select %17, %15, %20 : vector<32x128xi1>, vector<32x128xf32>
      %c0_16 = arith.constant 0 : index
      %c0_17 = arith.constant 0 : index
      %22 = vector.load %arg6[%c0_16, %c0_17] : memref<32x128xf32, #tpu.memory_space<vmem>>, vector<32x128xf32>
      tpu.vector_store %arg6[%c0_16, %c0_17], %21 {strides = array<i32>} : memref<32x128xf32, #tpu.memory_space<vmem>>, vector<32x128xf32>,
    } else {
    }
    return
  }
  func.func @transform_0(%arg0: i32, %arg1: i32) -> (i32, i32) {
    %c0_i32 = arith.constant 0 : i32
    return %arg0, %arg1 : i32, i32
  }
  func.func @transform_1(%arg0: i32, %arg1: i32) -> (i32, i32) {
    %c0_i32 = arith.constant 0 : i32
    %c0_i32_0 = arith.constant 0 : i32
    return %arg1, %c0_i32 : i32, i32
  }
  func.func @transform_2(%arg0: i32, %arg1: i32) -> (i32, i32) {
    %c0_i32 = arith.constant 0 : i32
    %c0_i32_0 = arith.constant 0 : i32
    %c0_i32_1 = arith.constant 0 : i32
    return %c0_i32, %c0_i32_0 : i32, i32
  }
  func.func @transform_3(%arg0: i32, %arg1: i32) -> (i32, i32) {
    %c0_i32 = arith.constant 0 : i32
    %c0_i32_0 = arith.constant 0 : i32
    %c0_i32_1 = arith.constant 0 : i32
    return %c0_i32, %c0_i32_0 : i32, i32
  }
  func.func @transform_4(%arg0: i32, %arg1: i32) -> (i32, i32) {
    %c0_i32 = arith.constant 0 : i32
    %c0_i32_0 = arith.constant 0 : i32
    return %arg0, %c0_i32 : i32, i32
  }
}

module attributes {stable_mosaic.version = 11 : i64} {
  func.func @head_kernel(%arg0: memref<2x16x16xf32, #tpu.memory_space<vmem>>, %arg1: memref<16x64xf32, #tpu.memory_space<vmem>>, %arg2: memref<1x64xf32, #tpu.memory_space<vmem>>, %arg3: memref<1x64xf32, #tpu.memory_space<vmem>>, %arg4: memref<64x1xf32, #tpu.memory_space<vmem>>, %arg5: memref<1x1xf32, #tpu.memory_space<vmem>>, %arg6: memref<2x1xf32, #tpu.memory_space<vmem>>) attributes {dimension_semantics = [], scalar_prefetch = 0 : i64, scratch_operands = 0 : i64, tpu.core_type = #tpu.core_type<tc>} {
    %c0 = arith.constant 0 : index
    %c0_0 = arith.constant 0 : index
    %c0_1 = arith.constant 0 : index
    %0 = vector.load %arg0[%c0, %c0_0, %c0_1] : memref<2x16x16xf32, #tpu.memory_space<vmem>>, vector<2x16x16xf32>
    %cst = arith.constant dense<0.000000e+00> : vector<2x16xf32>
    %1 = vector.multi_reduction <add>, %0, %cst [1] : vector<2x16x16xf32> to vector<2x16xf32>
    %cst_2 = arith.constant 1.600000e+01 : f32
    %2 = vector.broadcast %cst_2 : f32 to vector<2x16xf32>
    %3 = arith.divf %1, %2 : vector<2x16xf32>
    %c0_3 = arith.constant 0 : index
    %c0_4 = arith.constant 0 : index
    %4 = vector.load %arg1[%c0_3, %c0_4] : memref<16x64xf32, #tpu.memory_space<vmem>>, vector<16x64xf32>
    %cst_5 = arith.constant dense<0.000000e+00> : vector<2x64xf32>
    %5 = tpu.matmul %3, %4, %cst_5 {dimension_numbers = #tpu.dot_dimension_numbers<[1], [0], [0], [1], [0, 0, 1, 1], [], []>} : vector<2x16xf32>, vector<16x64xf32>, vector<2x64xf32> -> vector<2x64xf32>
    %c0_6 = arith.constant 0 : index
    %c0_7 = arith.constant 0 : index
    %6 = vector.load %arg2[%c0_6, %c0_7] : memref<1x64xf32, #tpu.memory_space<vmem>>, vector<1x64xf32>
    %7 = vector.broadcast %6 : vector<1x64xf32> to vector<2x64xf32>
    %8 = arith.addf %5, %7 : vector<2x64xf32>
    %cst_8 = arith.constant 0.000000e+00 : f32
    %9 = vector.broadcast %cst_8 : f32 to vector<2x64xf32>
    %10 = arith.cmpf oge, %8, %9 : vector<2x64xf32>
    %c0_9 = arith.constant 0 : index
    %c0_10 = arith.constant 0 : index
    %11 = vector.load %arg3[%c0_9, %c0_10] : memref<1x64xf32, #tpu.memory_space<vmem>>, vector<1x64xf32>
    %12 = vector.broadcast %11 : vector<1x64xf32> to vector<2x64xf32>
    %13 = arith.mulf %12, %8 : vector<2x64xf32>
    %14 = arith.select %10, %8, %13 : vector<2x64xi1>, vector<2x64xf32>
    %c0_11 = arith.constant 0 : index
    %c0_12 = arith.constant 0 : index
    %15 = vector.load %arg4[%c0_11, %c0_12] : memref<64x1xf32, #tpu.memory_space<vmem>>, vector<64x1xf32>
    %cst_13 = arith.constant dense<0.000000e+00> : vector<2x1xf32>
    %16 = tpu.matmul %14, %15, %cst_13 {dimension_numbers = #tpu.dot_dimension_numbers<[1], [0], [0], [1], [0, 0, 1, 1], [], []>} : vector<2x64xf32>, vector<64x1xf32>, vector<2x1xf32> -> vector<2x1xf32>
    %c0_14 = arith.constant 0 : index
    %c0_15 = arith.constant 0 : index
    %17 = vector.load %arg5[%c0_14, %c0_15] : memref<1x1xf32, #tpu.memory_space<vmem>>, vector<1x1xf32>
    %18 = vector.broadcast %17 : vector<1x1xf32> to vector<2x1xf32>
    %19 = arith.addf %16, %18 : vector<2x1xf32>
    %c0_16 = arith.constant 0 : index
    %c0_17 = arith.constant 0 : index
    %20 = vector.load %arg6[%c0_16, %c0_17] : memref<2x1xf32, #tpu.memory_space<vmem>>, vector<2x1xf32>
    tpu.vector_store %arg6[%c0_16, %c0_17], %19 {strides = array<i32>} : memref<2x1xf32, #tpu.memory_space<vmem>>, vector<2x1xf32>,
    return
  }
}

</mosaic_0001>

<bundles_post_ra>
// kernel: _lambda_.3
= control target key start
LH: loop header
LB: loop body
LE: loop exit
PB: predicated region body
PF: predicated region fallthrough
CT: control target
= control target key end

     0   :  { %s755_s15 = smov 0   ;;  %s757_s16 = smov 0   ;;  %s838_s0 = inlined_call_operand.vmem [shape: bf16[128,128], index: 0, kind: input, shape index: {}]   ;;  %s839_s1 = inlined_call_operand.vmem [shape: bf16[128,128], index: 1, kind: input, shape index: {}]   ;;  %s840_s2 = inlined_call_operand.vmem [shape: f32[1,128], index: 2, kind: input, shape index: {}]   ;;  %s841_s3 = inlined_call_operand.vmem [shape: f32[1,128], index: 3, kind: input, shape index: {}]   ;;  %s842_s4 = inlined_call_operand.vmem [shape: f32[128,128], index: 4, kind: output, shape index: {}]  }
   0x1   :  { %s759_s17 = smov 0  }
   0x2 LB: > { %s26_s18 = sadd.s32 1, %s724_s16  ;;  %p597_p0 = scmp.ge.s32.totalorder %s728_s17, 1  ;;  %s728_s17 = sphi %s759_s17, %s14_s17   ;;  %s724_s16 = sphi %s757_s16, %s844_s16   ;;  %s720_s15 = sphi %s755_s15, %s843_s15  }
   0x3   : > { %p28_p1 = scmp.ge.s32.totalorder %s26_s18, 2  ;;  %p191_p2 = scmp.lt.s32.totalorder %s728_s17, 3 }
   0x5   : > { %s846_s18 = smov (%p28_p1, %s26_s18), 0  ;;  %p192_p3 = pnand %p597_p0, %p191_p2 }
   0x6   : > { %v694_v0 = vld [vmem:[%s839_s1] sm:$0xff] (!%p192_p3)   ;;  %s598_s21 = sshll.u32 (!%p192_p3), %s720_s15, 3  ;;  %v695_v1 = vld [vmem:[%s839_s1 + $0x8] sm:$0xff] (!%p192_p3)   ;;  %v696_v2 = vld [vmem:[%s839_s1 + $0x10] sm:$0xff] (!%p192_p3)  }
   0x7   : > { %195 = sbr.rel (%p192_p3) target bundleno = 263 (0x107), region = 36  ;;  %p226_p4 = scmp.lt.s32.totalorder (!%p192_p3), %s598_s21, 15  ;;  %630 = vmatprep.subr.bf16.mxu0 (!%p192_p3), %v694_v0  ;;  %654 = vmatprep.subr.bf16.mxu1 (!%p192_p3), %v694_v0  ;;  %v697_v3 = vld [vmem:[%s839_s1 + $0x18] sm:$0xff] (!%p192_p3)   ;;  %v698_v6 = vld [vmem:[%s839_s1 + $0x20] sm:$0xff] (!%p192_p3)   ;;  %v699_v7 = vld [vmem:[%s839_s1 + $0x28] sm:$0xff] (!%p192_p3)  }
   0x8   : > { %631 = vmatpush3.bf16.msra.mxu0 (!%p192_p3), %v694_v0  ;;  %662 = vmatpush3.bf16.msra.mxu1 (!%p192_p3), %v694_v0  ;;  %v700_v8 = vld [vmem:[%s839_s1 + $0x30] sm:$0xff] (!%p192_p3)   ;;  %v701_v9 = vld [vmem:[%s839_s1 + $0x38] sm:$0xff] (!%p192_p3)   ;;  %v614_v12 = vld [vmem:[%s840_s2] ss:$0 sm:$0xff] (!%p192_p3) }
   0x9   : > { %632 = vmatprep.subr.bf16.mxu0 (!%p192_p3), %v695_v1  ;;  %655 = vmatprep.subr.bf16.mxu1 (!%p192_p3), %v695_v1  ;;  %v615_v14 = vld [vmem:[%s841_s3] ss:$0 sm:$0xff] (!%p192_p3) }
   0xc   : > { %633 = vmatpush3.bf16.msra.mxu0 (!%p192_p3), %v695_v1  ;;  %663 = vmatpush3.bf16.msra.mxu1 (!%p192_p3), %v695_v1 }
   0xd   : > { %634 = vmatprep.subr.bf16.mxu0 (!%p192_p3), %v696_v2  ;;  %656 = vmatprep.subr.bf16.mxu1 (!%p192_p3), %v696_v2 }
   0xe   : > { %s848_s21 = smov (!%p226_p4, %s598_s21), 15 }
   0xf   : > { %s599_s26 = sshll.u32 %s848_s21, 2  ;;  %s601_s19 = sshll.u32 %s848_s21, 3 }
  0x10   : > { %s788_s29 = scalar_lea.vmem %s838_s0, %s599_s26  ;;  %635 = vmatpush3.bf16.msra.mxu0 %v696_v2  ;;  %664 = vmatpush3.bf16.msra.mxu1 %v696_v2  ;;  %s819_s25 = scalar_lea.vmem %s842_s4, %s601_s19 }
  0x11   : > { %v702_v4 = vld [vmem:[%s788_s29] sm:$0xff]   ;;  %v703_v5 = vld [vmem:[%s788_s29 + $0x10] sm:$0xff]   ;;  %636 = vmatprep.subr.bf16.mxu0 %v697_v3  ;;  %657 = vmatprep.subr.bf16.mxu1 %v697_v3  ;;  %v704_v10 = vld [vmem:[%s788_s29 + $0x8] sm:$0xff]  }
  0x12   : > { %646 = vmatprep.mubr.bf16.mxu0 %v702_v4  ;;  %650 = vmatprep.mubr.bf16.mxu1 %v703_v5  ;;  %v705_v11 = vld [vmem:[%s788_s29 + $0x18] sm:$0xff]  }
  0x14   : > { %637 = vmatpush3.bf16.msra.mxu0 %v697_v3  ;;  %665 = vmatpush3.bf16.msra.mxu1 %v697_v3 }
  0x15   : > { %638 = vmatprep.subr.bf16.mxu0 %v698_v6  ;;  %658 = vmatprep.subr.bf16.mxu1 %v698_v6 }
  0x18   : > { %639 = vmatpush3.bf16.msra.mxu0 %v698_v6  ;;  %666 = vmatpush3.bf16.msra.mxu1 %v698_v6 }
  0x19   : > { %640 = vmatprep.subr.bf16.mxu0 %v699_v7  ;;  %659 = vmatprep.subr.bf16.mxu1 %v699_v7 }
  0x1c   : > { %641 = vmatpush3.bf16.msra.mxu0 %v699_v7  ;;  %667 = vmatpush3.bf16.msra.mxu1 %v699_v7 }
  0x1d   : > { %642 = vmatprep.subr.bf16.mxu0 %v700_v8  ;;  %660 = vmatprep.subr.bf16.mxu1 %v700_v8 }
  0x20   : > { %643 = vmatpush3.bf16.msra.mxu0 %v700_v8  ;;  %668 = vmatpush3.bf16.msra.mxu1 %v700_v8 }
  0x21   : > { %644 = vmatprep.subr.bf16.mxu0 %v701_v9  ;;  %661 = vmatprep.subr.bf16.mxu1 %v701_v9 }
  0x24   : > { %645 = vmatpush3.bf16.msra.mxu0 %v701_v9  ;;  %669 = vmatpush3.bf16.msra.mxu1 %v701_v9 }
  0x27   : > { %647 = vmatmul.mubr.bf16.vlgmr.msra.gmra.mrb[0].mxu0 %v704_v10  ;;  %651 = vmatmul.mubr.bf16.vlgmr.msra.gmra.mrb[0].mxu1 %v705_v11 }
  0xfa   : > { %v648_v13 = vpop.f32.mrb[0].mxu0  ;;  %v652_v15 = vpop.f32.mrb[0].mxu1 }
  0xfb   : > { %v464_v16 = vadd.f32 %v648_v13, %v614_v12  ;;  %v468_v17 = vadd.f32 %v652_v15, %v614_v12  ;;  %v397_v18 = vpop.f32.mrb[1].mxu0  ;;  %v413_v19 = vpop.f32.mrb[1].mxu1 }
  0xfc   : > { %v462_v20 = vadd.f32 %v614_v12, %v397_v18  ;;  %v466_v21 = vadd.f32 %v614_v12, %v413_v19  ;;  %v649_v22 = vpop.f32.mrb[2].mxu0  ;;  %v653_v23 = vpop.f32.mrb[2].mxu1 }
  0xfd   : > { %vm472_vm0 = vcmp.ge.f32.partialorder %v464_v16, 0.0  ;;  %v487_v24 = vmul.f32 %v615_v14, %v464_v16  ;;  %vm476_vm1 = vcmp.ge.f32.partialorder %v468_v17, 0.0  ;;  %v491_v25 = vmul.f32 %v615_v14, %v468_v17  ;;  %v400_v26 = vpop.f32.mrb[3].mxu0  ;;  %v416_v27 = vpop.f32.mrb[3].mxu1 }
  0xfe   : > { %vm470_vm2 = vcmp.ge.f32.partialorder %v462_v20, 0.0  ;;  %v485_v28 = vmul.f32 %v615_v14, %v462_v20  ;;  %vm474_vm3 = vcmp.ge.f32.partialorder %v466_v21, 0.0  ;;  %v489_v29 = vmul.f32 %v615_v14, %v466_v21 }
  0xff   : > { %v495_v30 = vsel %vm472_vm0, %v464_v16, %v487_v24  ;;  %v499_v31 = vsel %vm476_vm1, %v468_v17, %v491_v25  ;;  %v465_v32 = vadd.f32 %v649_v22, %v614_v12  ;;  %v469_v33 = vadd.f32 %v653_v23, %v614_v12 }
 0x100   : > { %503 = vst [vmem:[%s819_s25 + $0x10] sm:$0xff] %v495_v30  ;;  %507 = vst [vmem:[%s819_s25 + $0x30] sm:$0xff] %v499_v31  ;;  %v493_v34 = vsel %vm470_vm2, %v462_v20, %v485_v28  ;;  %v497_v35 = vsel %vm474_vm3, %v466_v21, %v489_v29  ;;  %v463_v36 = vadd.f32 %v614_v12, %v400_v26 }
 0x101   : > { %v467_v37 = vadd.f32 %v614_v12, %v416_v27  ;;  %501 = vst [vmem:[%s819_s25] sm:$0xff] %v493_v34  ;;  %505 = vst [vmem:[%s819_s25 + $0x20] sm:$0xff] %v497_v35  ;;  %vm473_vm4 = vcmp.ge.f32.partialorder %v465_v32, 0.0  ;;  %v488_v38 = vmul.f32 %v615_v14, %v465_v32  ;;  %vm477_vm5 = vcmp.ge.f32.partialorder %v469_v33, 0.0 }
 0x102   : > { %v492_v39 = vmul.f32 %v615_v14, %v469_v33  ;;  %vm471_vm6 = vcmp.ge.f32.partialorder %v463_v36, 0.0  ;;  %v486_v40 = vmul.f32 %v615_v14, %v463_v36 }
 0x103   : > { %vm475_vm7 = vcmp.ge.f32.partialorder %v467_v37, 0.0  ;;  %v490_v41 = vmul.f32 %v615_v14, %v467_v37  ;;  %v496_v42 = vsel %vm473_vm4, %v465_v32, %v488_v38 }
 0x104   : > { %v500_v43 = vsel %vm477_vm5, %v469_v33, %v492_v39  ;;  %504 = vst [vmem:[%s819_s25 + $0x18] sm:$0xff] %v496_v42  ;;  %v494_v44 = vsel %vm471_vm6, %v463_v36, %v486_v40 }
 0x105   : > { %508 = vst [vmem:[%s819_s25 + $0x38] sm:$0xff] %v500_v43  ;;  %v498_v45 = vsel %vm475_vm7, %v467_v37, %v490_v41  ;;  %502 = vst [vmem:[%s819_s25 + $0x8] sm:$0xff] %v494_v44 }
 0x106   : > { %506 = vst [vmem:[%s819_s25 + $0x28] sm:$0xff] %v498_v45 }
 0x107 PF: > { %s14_s17 = sadd.s32 1, %s728_s17   ;;  %s843_s15 = smov %s724_s16 }
 0x108   : > { %p11_p5 = scmp.ge.s32.totalorder %s14_s17, 4   ;;  %s844_s16 = smov %s846_s18 }
 0x10a   :  { %13 = sbr.rel (!%p11_p5) target bundleno = 2 (0x2), region = 77 }

// kernel: _lambda_.5
= control target key start
LH: loop header
LB: loop body
LE: loop exit
PB: predicated region body
PF: predicated region fallthrough
CT: control target
= control target key end

     0   :  { %vm29_vm0 = vcmask 130048   ;;  %v302_v0 = vmov 0.0|0.0   ;;  %vm303_vm1 = vmmov 0   ;;  %v304_v3 = vmov 0.0   ;;  %s399_s1 = inlined_call_operand.vmem [shape: f32[16,64], index: 1, kind: input, shape index: {}]   ;;  %s400_s0 = inlined_call_operand.vmem [shape: f32[2,16,16], index: 0, kind: input, shape index: {}]   ;;  %s401_s4 = inlined_call_operand.vmem [shape: f32[64,1], index: 4, kind: input, shape index: {}]   ;;  %s402_s5 = inlined_call_operand.<no memory space> [shape: f32[1,1], index: 5, kind: input, shape index: {}]   ;;  %s403_s2 = inlined_call_operand.vmem [shape: f32[1,64], index: 2, kind: input, shape index: {}]   ;;  %s404_s3 = inlined_call_operand.vmem [shape: f32[1,64], index: 3, kind: input, shape index: {}]   ;;  %s405_s6 = inlined_call_operand.vmem [shape: f32[2,1], index: 6, kind: output, shape index: {}]  }
   0x1   :  { %284 = vmatprep.subr.bf16.mxu0 %v302_v0  ;;  %v51_v1 = vld [vmem:[%s399_s1] sm:$0xff]  ;;  %v52_v2 = vld [vmem:[%s399_s1 + $0x8] sm:$0xff]  ;;  %262 = vmatprep.mubr.msk.f32.mxu0 %vm303_vm1, %v304_v3  ;;  %v27_v7 = vld [vmem:[%s400_s0 + $0x10] sm:$0xff]  ;;  %vm62_vm2 = vcmask 1041409   ;;  %v11_v42 = vstv %s402_s5  ;;  %vm161_vm4 = vcmask 523264   ;;  %vm235_vm5 = vcmask 1024  }
   0x2   :  { %v25_v4 = vld [vmem:[%s400_s0] sm:$0xff]  ;;  %v285_v5 = vpack.c.bf16 %v52_v2, %v51_v1  ;;  %v26_v6 = vld [vmem:[%s400_s0 + $0x8] sm:$0xff]  ;;  %v28_v8 = vld [vmem:[%s400_s0 + $0x18] sm:$0xff]  ;;  %287 = vmatprep.subr.bf16.mxu1 %v302_v0  ;;  %281 = vmatprep.mubr.msk.f32.mxu1 %vm303_vm1, %v304_v3  ;;  %v39_v11 = vsel %vm29_vm0, %v27_v7, 0.0  ;;  %12 = vst [vmem:[#allocation2] sm:$0x1] %v11_v42 }
   0x3   :  { %v30_v9 = vsel %vm29_vm0, %v25_v4, 0.0  ;;  %v31_v10 = vsel %vm29_vm0, %v26_v6, 0.0  ;;  %v40_v12 = vsel %vm29_vm0, %v28_v8, 0.0  ;;  %v146_v13 = vld [vmem:[%s401_s4] sm:$0xff]  ;;  %v147_v14 = vld [vmem:[%s401_s4 + $0x8] sm:$0xff]  ;;  %v148_v15 = vld [vmem:[%s401_s4 + $0x10] sm:$0xff] }
   0x4   :  { %286 = vmatpush3.bf16.msra.mxu0 %v285_v5  ;;  %v32_v16 = vadd.f32 %v31_v10, %v30_v9  ;;  %v41_v17 = vadd.f32 %v40_v12, %v39_v11  ;;  %v288_v18 = vpack.c.bf16 %v147_v14, %v146_v13  ;;  %v149_v19 = vld [vmem:[%s401_s4 + $0x18] sm:$0xff]  ;;  %v150_v23 = vld [vmem:[%s401_s4 + $0x20] sm:$0xff]  ;;  %v151_v24 = vld [vmem:[%s401_s4 + $0x28] sm:$0xff] }
   0x5   :  { %v291_v22 = vpack.c.bf16 %v149_v19, %v148_v15  ;;  %v294_v29 = vpack.c.bf16 %v151_v24, %v150_v23  ;;  %v152_v39 = vld [vmem:[%s401_s4 + $0x30] sm:$0xff]  ;;  %v153_v40 = vld [vmem:[%s401_s4 + $0x38] sm:$0xff]  ;;  %v241_v43 = vld [vmem:[%s403_s2] ss:$0 sm:$0xff] }
   0x6   :  { %v33_v20 = vrot.slane %v32_v16, 4  ;;  %v42_v21 = vrot.slane %v41_v17, 4  ;;  %289 = vmatpush3.bf16.msra.mxu1 %v288_v18  ;;  %v297_v41 = vpack.c.bf16 %v153_v40, %v152_v39  ;;  %v243_v45 = vld [vmem:[%s404_s3] ss:$0 sm:$0xff] }
   0x7   :  { %290 = vmatprep.subr.bf16.mxu1 %v302_v0 }
   0x8   :  { %v34_v25 = vadd.f32 %v33_v20, %v32_v16  ;;  %v43_v26 = vadd.f32 %v42_v21, %v41_v17 }
   0x9   :  { %v244_v50 = vld [vmem:[#allocation2] ss:$0 sm:$0xff] }
   0xa   :  { %v35_v27 = vrot.slane %v34_v25, 2  ;;  %v44_v28 = vrot.slane %v43_v26, 2  ;;  %292 = vmatpush3.bf16.msra.mxu1 %v291_v22 }
   0xb   :  { %293 = vmatprep.subr.bf16.mxu1 %v302_v0 }
   0xc   :  { %v36_v30 = vadd.f32 %v35_v27, %v34_v25  ;;  %v45_v31 = vadd.f32 %v44_v28, %v43_v26 }
   0xe   :  { %v37_v32 = vrot.slane %v36_v30, 1  ;;  %v46_v33 = vrot.slane %v45_v31, 1  ;;  %295 = vmatpush3.bf16.msra.mxu1 %v294_v29 }
   0xf   :  { %296 = vmatprep.subr.bf16.mxu1 %v302_v0 }
  0x10   :  { %v38_v34 = vadd.f32 %v37_v32, %v36_v30  ;;  %v47_v35 = vadd.f32 %v46_v33, %v45_v31 }
  0x12   :  { %v49_v36 = vmul.f32 0.0625, %v38_v34  ;;  %v50_v37 = vmul.f32 0.0625, %v47_v35  ;;  %298 = vmatpush3.bf16.msra.mxu1 %v297_v41 }
  0x14   :  { %v63_v38 = vsel %vm62_vm2, %v50_v37, %v49_v36 }
  0x15   :  { %263 = vmatmul.mubr.msk.f32.vlgmr.msra.gmra.mrb[0].mxu0 %vm29_vm0, %v63_v38 }
  0xe8   :  { %v132_v44 = vpop.f32.mrb[0].mxu0 }
  0xe9   :  { %v133_v46 = vadd.f32 %v241_v43, %v132_v44  ;;  %v264_v47 = vpop.f32.mrb[1].mxu0 }
  0xeb   :  { %vm136_vm3 = vcmp.ge.f32.partialorder %v133_v46, 0.0  ;;  %v144_v48 = vmul.f32 %v243_v45, %v133_v46 }
  0xed   :  { %v145_v49 = vsel %vm136_vm3, %v133_v46, %v144_v48 }
  0xee   :  { %282 = vmatmul.mubr.msk.f32.vlgmr.msra.gmra.mrb[0].mxu1 %vm161_vm4, %v145_v49 }
 0x1c1   :  { %v231_v51 = vpop.f32.mrb[0].mxu1 }
 0x1c2   :  { %v232_v52 = vadd.f32 %v244_v50, %v231_v51  ;;  %v283_v53 = vpop.f32.mrb[1].mxu1 }
 0x1c4   :  { %236 = vst.msk [vmem:[%s405_s6] sm:$0x3] %vm235_vm5, %v232_v52 }

// kernel: _lambda_.4
= control target key start
LH: loop header
LB: loop body
LE: loop exit
PB: predicated region body
PF: predicated region fallthrough
CT: control target
= control target key end

     0   :  { %s740_s15 = smov 0   ;;  %s742_s16 = smov 0   ;;  %s842_s0 = inlined_call_operand.vmem [shape: bf16[32,256], index: 0, kind: input, shape index: {}]   ;;  %s843_s1 = inlined_call_operand.vmem [shape: bf16[256,128], index: 1, kind: input, shape index: {}]   ;;  %s844_s2 = inlined_call_operand.vmem [shape: f32[1,128], index: 2, kind: input, shape index: {}]   ;;  %s845_s3 = inlined_call_operand.vmem [shape: f32[1,128], index: 3, kind: input, shape index: {}]   ;;  %s846_s4 = inlined_call_operand.vmem [shape: f32[32,128], index: 4, kind: output, shape index: {}]  }
   0x1   :  { %s744_s17 = smov 0   ;;  %s746_s18 = smov 0  }
   0x2   :  { %s748_s19 = smov 0  }
   0x3 LB: > { %s23_s20 = sadd.s32 1, %s708_s18  ;;  %p42_p1 = scmp.ne.s32.totalorder %s700_s16, %s696_s15  ;;  %s712_s19 = sphi %s748_s19, %s14_s19   ;;  %s708_s18 = sphi %s746_s18, %s850_s18   ;;  %s704_s17 = sphi %s744_s17, %s849_s17   ;;  %s700_s16 = sphi %s742_s16, %s848_s16   ;;  %s696_s15 = sphi %s740_s15, %s847_s15  }
   0x4   : > { %p24_p0 = scmp.ge.s32.totalorder %s23_s20, 2  ;;  %p43_p2 = scmp.eq.s32.totalorder %s712_s19, 0 }
   0x5   : > { %s35_s22 = sadd.s32 1, %s700_s16  ;;  %p568_p5 = scmp.ge.s32.totalorder %s712_s19, 2 }
   0x6   : > { %s852_s20 = smov (%p24_p0, %s23_s20), 0  ;;  %p44_p3 = por %p43_p2, %p42_p1 }
   0x7   : > { %s31_s21 = ssub.s32 %s708_s18, %s852_s20  ;;  %168 = sbr.rel (%p568_p5) target bundleno = 21 (0x15), region = 24 }
   0x8   : > { %p33_p4 = scmp.eq.s32.totalorder %s31_s21, 0 }
   0xa   : > { %s775_s23 = scalar_select %p33_p4, %s700_s16, %s35_s22  }
   0xe   : > { %171 = sbr.rel (!%p44_p3) target bundleno = 21 (0x15), region = 28  ;;  %s173_s24 = sand.u32 (%p44_p3), 1, %s700_s16  }
   0xf   : > { %s570_s25 = sshll.u32 (%p44_p3), %s708_s18, 2  ;;  %s569_s26 = sshll.u32 (%p44_p3), %s173_s24, 4 }
  0x10   : > { %s180_s29 = scalar_lea.vmem (%p44_p3), %s842_s0, %s570_s25  ;;  %s175_s30 = scalar_lea.vmem (%p44_p3), [#allocation3], %s569_s26 }
  0x11   : > { %v196_v0 = vld [vmem:[%s180_s29] sm:$0xf] (%p44_p3)  ;;  %v198_v1 = vld [vmem:[%s180_s29 + $0x8] sm:$0xf] (%p44_p3)  ;;  %v200_v2 = vld [vmem:[%s180_s29 + $0x10] sm:$0xf] (%p44_p3) }
  0x12   : > { %197 = vst [vmem:[%s175_s30] sm:$0xf] (%p44_p3), %v196_v0  ;;  %199 = vst [vmem:[%s175_s30 + $0x4] sm:$0xf] (%p44_p3), %v198_v1  ;;  %v202_v3 = vld [vmem:[%s180_s29 + $0x18] sm:$0xf] (%p44_p3) }
  0x13   : > { %201 = vst [vmem:[%s175_s30 + $0x8] sm:$0xf] (%p44_p3), %v200_v2  ;;  %203 = vst [vmem:[%s175_s30 + $0xc] sm:$0xf] (%p44_p3), %v202_v3 }
  0x15 PF: > { %p571_p6 = scmp.ge.s32.totalorder %s712_s19, 1  ;;  %p242_p7 = scmp.lt.s32.totalorder %s712_s19, 3 }
  0x17   : > { %p243_p8 = pnand %p571_p6, %p242_p7 }
  0x18   : > { %s249_s5 = sand.u32 (!%p243_p8), 1, %s696_s15   ;;  %s573_s6 = sshll.u32 (!%p243_p8), %s704_s17, 4 }
  0x19   : > { %246 = sbr.rel (%p243_p8) target bundleno = 303 (0x12f), region = 73  ;;  %s787_s7 = sshll.u32 (!%p243_p8), %s249_s5, 4 }
  0x1a   : > { %p281_p9 = scmp.lt.s32.totalorder (!%p243_p8), %s573_s6, 31  ;;  %s251_s12 = scalar_lea.vmem (!%p243_p8), [#allocation3], %s787_s7 }
  0x1b   : > { %p575_p10 = scmp.ne.s32.totalorder (!%p243_p8), %s704_s17, 0 }
  0x20   : > { %s854_s6 = smov (!%p281_p9, %s573_s6), 31  ;;  %296 = sbr.rel (%p575_p10) target bundleno = 39 (0x27), region = 81 }
  0x21   : > { %s574_s8 = sshll.u32 %s854_s6, 2  ;;  %v714_v4 = vmov (!%p575_p10), 0.0  }
  0x22   : > { %s792_s11 = scalar_lea.vmem %s843_s1, %s574_s8  ;;  %297 = vst [vmem:[#allocation2] sm:$0xff] (!%p575_p10), %v714_v4  ;;  %298 = vst [vmem:[#allocation2 + $0x8] sm:$0xff] (!%p575_p10), %v714_v4 }
  0x23   : > { %299 = vst [vmem:[#allocation2 + $0x10] sm:$0xff] (!%p575_p10), %v714_v4  ;;  %300 = vst [vmem:[#allocation2 + $0x18] sm:$0xff] (!%p575_p10), %v714_v4 }
  0x27 PF: > { %v664_v5 = vld [vmem:[%s792_s11] sm:$0xff]   ;;  %v665_v6 = vld [vmem:[%s792_s11 + $0x8] sm:$0xff]   ;;  %v666_v7 = vld [vmem:[%s792_s11 + $0x10] sm:$0xff]   ;;  %p586_p11 = scmp.ne.s32.totalorder %s704_s17, 1 }
  0x28   : > { %603 = vmatprep.subr.bf16.mxu0 %v664_v5  ;;  %v667_v8 = vld [vmem:[%s792_s11 + $0x18] sm:$0xff]   ;;  %v672_v9 = vld [vmem:[%s251_s12] sm:$0xff]   ;;  %v669_v11 = vld [vmem:[%s792_s11 + $0x28] sm:$0xff]  }
  0x29   : > { %604 = vmatpush3.bf16.msra.mxu0 %v664_v5  ;;  %619 = vmatprep.mubr.bf16.mxu0 %v672_v9  ;;  %v668_v10 = vld [vmem:[%s792_s11 + $0x20] sm:$0xff]   ;;  %v670_v12 = vld [vmem:[%s792_s11 + $0x30] sm:$0xff]   ;;  %v671_v13 = vld [vmem:[%s792_s11 + $0x38] sm:$0xff]  }
  0x2a   : > { %605 = vmatprep.subr.bf16.mxu0 %v665_v6  ;;  %v673_v14 = vld [vmem:[%s251_s12 + $0x8] sm:$0xff]   ;;  %v303_v15 = vld [vmem:[#allocation2 + $0x10] sm:$0xff]  ;;  %v301_v16 = vld [vmem:[#allocation2] sm:$0xff] }
  0x2b   : > { %v304_v18 = vld [vmem:[#allocation2 + $0x18] sm:$0xff]  ;;  %v302_v21 = vld [vmem:[#allocation2 + $0x8] sm:$0xff]  ;;  %v587_v28 = vld [vmem:[%s844_s2] ss:$0 sm:$0xff] (!%p586_p11) }
  0x2c   : > { %v588_v29 = vld [vmem:[%s845_s3] ss:$0 sm:$0xff] (!%p586_p11) }
  0x2d   : > { %606 = vmatpush3.bf16.msra.mxu0 %v665_v6 }
  0x2e   : > { %607 = vmatprep.subr.bf16.mxu0 %v666_v7 }
  0x31   : > { %608 = vmatpush3.bf16.msra.mxu0 %v666_v7 }
  0x32   : > { %609 = vmatprep.subr.bf16.mxu0 %v667_v8 }
  0x35   : > { %610 = vmatpush3.bf16.msra.mxu0 %v667_v8 }
  0x36   : > { %611 = vmatprep.subr.bf16.mxu0 %v668_v10 }
  0x39   : > { %612 = vmatpush3.bf16.msra.mxu0 %v668_v10 }
  0x3a   : > { %613 = vmatprep.subr.bf16.mxu0 %v669_v11 }
  0x3d   : > { %614 = vmatpush3.bf16.msra.mxu0 %v669_v11 }
  0x3e   : > { %615 = vmatprep.subr.bf16.mxu0 %v670_v12 }
  0x41   : > { %616 = vmatpush3.bf16.msra.mxu0 %v670_v12 }
  0x42   : > { %617 = vmatprep.subr.bf16.mxu0 %v671_v13 }
  0x45   : > { %618 = vmatpush3.bf16.msra.mxu0 %v671_v13 }
  0x48   : > { %620 = vmatmul.mubr.bf16.vlgmr.msra.gmra.mrb[0].mxu0 %v673_v14 }
 0x11b   : > { %v621_v17 = vpop.f32.mrb[0].mxu0  ;;  %445 = sbr.rel (%p586_p11) target bundleno = 303 (0x12f), region = 85 }
 0x11c   : > { %v436_v19 = vadd.f32 %v621_v17, %v303_v15  ;;  %v419_v20 = vpop.f32.mrb[1].mxu0 }
 0x11d   : > { %v434_v22 = vadd.f32 %v419_v20, %v301_v16  ;;  %v622_v23 = vpop.f32.mrb[2].mxu0 }
 0x11e   : > { %440 = vst [vmem:[#allocation2 + $0x10] sm:$0xff] %v436_v19  ;;  %v437_v24 = vadd.f32 %v622_v23, %v304_v18  ;;  %v422_v25 = vpop.f32.mrb[3].mxu0 }
 0x11f   : > { %438 = vst [vmem:[#allocation2] sm:$0xff] %v434_v22  ;;  %v435_v26 = vadd.f32 %v422_v25, %v302_v21 }
 0x120   : > { %441 = vst [vmem:[#allocation2 + $0x18] sm:$0xff] %v437_v24 }
 0x121   : > { %439 = vst [vmem:[#allocation2 + $0x8] sm:$0xff] %v435_v26 }
 0x125   : > { %v448_v32 = vld [vmem:[#allocation2 + $0x10] sm:$0xff] }
 0x126   : > { %v446_v27 = vld [vmem:[#allocation2] sm:$0xff]  ;;  %v459_v35 = vadd.f32 %v587_v28, %v448_v32 }
 0x127   : > { %v457_v30 = vadd.f32 %v587_v28, %v446_v27  ;;  %v449_v33 = vld [vmem:[#allocation2 + $0x18] sm:$0xff] }
 0x128   : > { %v447_v31 = vld [vmem:[#allocation2 + $0x8] sm:$0xff]  ;;  %v460_v36 = vadd.f32 %v587_v28, %v449_v33  ;;  %vm463_vm2 = vcmp.ge.f32.partialorder %v459_v35, 0.0  ;;  %v474_v39 = vmul.f32 %v588_v29, %v459_v35 }
 0x129   : > { %v458_v34 = vadd.f32 %v587_v28, %v447_v31  ;;  %vm461_vm0 = vcmp.ge.f32.partialorder %v457_v30, 0.0  ;;  %v472_v37 = vmul.f32 %v588_v29, %v457_v30 }
 0x12a   : > { %vm464_vm3 = vcmp.ge.f32.partialorder %v460_v36, 0.0  ;;  %v475_v41 = vmul.f32 %v588_v29, %v460_v36  ;;  %v478_v43 = vsel %vm463_vm2, %v459_v35, %v474_v39 }
 0x12b   : > { %vm462_vm1 = vcmp.ge.f32.partialorder %v458_v34, 0.0  ;;  %v473_v38 = vmul.f32 %v588_v29, %v458_v34  ;;  %v476_v40 = vsel %vm461_vm0, %v457_v30, %v472_v37  ;;  %482 = vst [vmem:[%s846_s4 + $0x10] sm:$0xff] %v478_v43 }
 0x12c   : > { %480 = vst [vmem:[%s846_s4] sm:$0xff] %v476_v40  ;;  %v479_v44 = vsel %vm464_vm3, %v460_v36, %v475_v41 }
 0x12d   : > { %v477_v42 = vsel %vm462_vm1, %v458_v34, %v473_v38  ;;  %483 = vst [vmem:[%s846_s4 + $0x18] sm:$0xff] %v479_v44 }
 0x12e   : > { %481 = vst [vmem:[%s846_s4 + $0x8] sm:$0xff] %v477_v42 }
 0x12f PF: > { %s14_s19 = sadd.s32 1, %s712_s19   ;;  %s847_s15 = smov %s700_s16 }
 0x130   : > { %p11_p12 = scmp.ge.s32.totalorder %s14_s19, 4   ;;  %s848_s16 = smov %s775_s23 }
 0x131   : > { %s849_s17 = smov %s708_s18  ;;  %s850_s18 = smov %s852_s20 }
 0x132   :  { %13 = sbr.rel (!%p11_p12) target bundleno = 3 (0x3), region = 123 }

</bundles_post_ra>
